<compile_context>
chip_gen: v7x
topology: tpu7x:2x2x1
jax: 0.10.0
libtpu: 0.0.40
codegen_flags: <defaults>
</compile_context>

<pallas_src>
import functools
import math

import numpy as np
import jax
import jax.numpy as jnp
from jax.experimental import pallas as pl
from jax.experimental.pallas import tpu as pltpu

WINDOW_SIZE = 11
SIGMA = 1.5
C1 = 0.01 ** 2
C2 = 0.03 ** 2


def gaussian_1d(window_size, sigma):
    # Matches the PyTorch `gaussian()` helper exactly.
    g = np.array(
        [math.exp(-((x - window_size // 2) ** 2) / (2.0 * sigma ** 2))
         for x in range(window_size)], dtype=np.float64)
    return (g / g.sum()).astype(np.float32)


def _band_right(n, g, pad):
    """M[c, j] = g[c - j + pad] for |c - j| <= pad.

    (X @ M)[:, j] = sum_b g[b] * X[:, j + b - pad] with zero padding at the
    borders, i.e. the 1-D correlation the depthwise conv performs."""
    m = np.zeros((n, n), np.float32)
    for c in range(n):
        for j in range(max(0, c - pad), min(n, c + pad + 1)):
            m[c, j] = g[c - j + pad]
    return m


def _ssim_kernel(bw_ref, bh_ref, sel_ref, x1_ref, x2_ref, out_ref):
    T, H, W = x1_ref.shape
    x1 = x1_ref[...].reshape(T * H, W)
    x2 = x2_ref[...].reshape(T * H, W)

    # Five blur operands, row-stacked -> a single operand per MXU pass.
    xs = jnp.concatenate([x1, x2, x1 * x1, x2 * x2, x1 * x2], axis=0)  # (5TH, W)

    # Horizontal pass: one big matmul; the band matrix encodes zero padding.
    h = jnp.dot(xs, bw_ref[...], preferred_element_type=jnp.float32)   # (5TH, W)

    # Per-plane transpose (XLU) so the vertical pass is also one big matmul.
    ht = jnp.swapaxes(h.reshape(5 * T, H, W), 1, 2).reshape(5 * T * W, H)

    # Vertical pass.  Result stays per-plane transposed (W, H); everything
    # downstream is elementwise / summed, so it never needs to be undone.
    v = jnp.dot(ht, bh_ref[...], preferred_element_type=jnp.float32)   # (5TW, H)

    n = T * W
    mu1, mu2 = v[0:n], v[n:2 * n]
    b11, b22, b12 = v[2 * n:3 * n], v[3 * n:4 * n], v[4 * n:5 * n]

    mu1_sq = mu1 * mu1
    mu2_sq = mu2 * mu2
    mu1_mu2 = mu1 * mu2
    sigma1_sq = b11 - mu1_sq
    sigma2_sq = b22 - mu2_sq
    sigma12 = b12 - mu1_mu2

    num = (2.0 * mu1_mu2 + C1) * (2.0 * sigma12 + C2)
    den = (mu1_sq + mu2_sq + C1) * (sigma1_sq + sigma2_sq + C2)
    ssim_map = num * pl.reciprocal(den, approx=False)          # (T*W, H), f32

    # Per-plane partial sums: lane reduce, then sum groups of W rows with a
    # tiny selector matmul.  Output block is (1, T, 1).
    colsum = jnp.sum(ssim_map, axis=-1, keepdims=True)          # (T*W, 1)
    psum = jnp.dot(sel_ref[...], colsum,
                   preferred_element_type=jnp.float32)          # (T, 1)
    out_ref[...] = psum.reshape(1, T, 1)


def _choose_tile(bc, h, w):
    # ~40 live f32 copies of one (T, H, W) plane-group in the worst case; keep
    # the working set well under v7x's 64 MiB physical / 32 MiB scoped VMEM.
    budget_bytes = 24 * 1024 * 1024
    t_cap = max(1, budget_bytes // (40 * 4 * h * w))
    t = min(bc, t_cap)
    if bc >= 2:
        t = min(t, -(-bc // 2))   # >= 2 grid steps so both v7x cores get work
    return max(1, t)


@functools.partial(jax.jit, static_argnames=("window_size", "size_average"))
def ssim_pallas(img1, img2, window_size=WINDOW_SIZE, size_average=True):
    B, C, H, W = img1.shape
    BC = B * C
    pad = window_size // 2
    g = gaussian_1d(window_size, SIGMA)

    T = _choose_tile(BC, H, W)
    G = -(-BC // T)               # grid steps
    BCp = G * T                   # planes padded up to a multiple of T

    # Compile-time constant band matrices (tiny: (W,W), (H,H)) and selector.
    bw = jnp.asarray(_band_right(W, g, pad))   # horizontal (right-mult)
    bh = jnp.asarray(_band_right(H, g, pad))   # vertical (right-mult on P^T)
    sel_np = np.zeros((T, T * W), np.float32)
    for p in range(T):
        sel_np[p, p * W:(p + 1) * W] = 1.0
    sel = jnp.asarray(sel_np)

    # Natural layout: (B,C,H,W) -> (BCp, H, W).  No host-side transpose.
    x1 = img1.astype(jnp.float32).reshape(BC, H, W)
    x2 = img2.astype(jnp.float32).reshape(BC, H, W)
    if BCp != BC:
        zp = ((0, BCp - BC), (0, 0), (0, 0))
        x1 = jnp.pad(x1, zp)
        x2 = jnp.pad(x2, zp)

    plane_sums = pl.pallas_call(
        _ssim_kernel,
        out_shape=jax.ShapeDtypeStruct((G, T, 1), jnp.float32),
        grid_spec=pltpu.PrefetchScalarGridSpec(
            num_scalar_prefetch=0,
            grid=(G,),
            in_specs=[
                pl.BlockSpec((W, W), lambda i: (0, 0)),
                pl.BlockSpec((H, H), lambda i: (0, 0)),
                pl.BlockSpec((T, T * W), lambda i: (0, 0)),
                pl.BlockSpec((T, H, W), lambda i: (i, 0, 0)),
                pl.BlockSpec((T, H, W), lambda i: (i, 0, 0)),
            ],
            out_specs=pl.BlockSpec((1, T, 1), lambda i: (i, 0, 0)),
        ),
        compiler_params=pltpu.CompilerParams(
            dimension_semantics=("parallel",),
            vmem_limit_bytes=48 * 1024 * 1024),
    )(bw, bh, sel, x1, x2)

    per_plane = plane_sums.reshape(-1)[:BC]     # drop zero-padded planes
    if size_average:
        # ssim_map.mean() over all B*C*H*W elements.
        return jnp.sum(per_plane) / (BC * H * W)
    # size_average=False: per-image mean over (C,H,W), matching
    # ssim_map.mean(1).mean(1).mean(1) in the PyTorch reference.
    return jnp.sum(per_plane.reshape(B, C), axis=1) / (C * H * W)


def ssim_ref(img1, img2, window_size=WINDOW_SIZE):
    """Pure-JAX reference mirroring the PyTorch _ssim() exactly."""
    B, C, H, W = img1.shape
    pad = window_size // 2
    g = gaussian_1d(window_size, SIGMA)
    w2d = jnp.asarray(np.outer(g, g), dtype=jnp.float32)
    window = jnp.tile(w2d[None, None], (C, 1, 1, 1))   # (C,1,ws,ws) depthwise

    def conv(x):
        return jax.lax.conv_general_dilated(
            x, window, window_strides=(1, 1),
            padding=[(pad, pad), (pad, pad)],
            dimension_numbers=("NCHW", "OIHW", "NCHW"),
            feature_group_count=C)

    mu1 = conv(img1)
    mu2 = conv(img2)
    mu1_sq, mu2_sq, mu1_mu2 = mu1 * mu1, mu2 * mu2, mu1 * mu2
    sigma1_sq = conv(img1 * img1) - mu1_sq
    sigma2_sq = conv(img2 * img2) - mu2_sq
    sigma12 = conv(img1 * img2) - mu1_mu2
    ssim_map = ((2 * mu1_mu2 + C1) * (2 * sigma12 + C2)) / (
        (mu1_sq + mu2_sq + C1) * (sigma1_sq + sigma2_sq + C2))
    return ssim_map.mean()


if __name__ == "__main__":
    key = jax.random.PRNGKey(0)
    k1, k2 = jax.random.split(key)
    B, C, H, W = 2, 4, 16, 16
    img1 = jax.random.uniform(k1, (B, C, H, W), dtype=jnp.float32)
    img2 = jax.random.uniform(k2, (B, C, H, W), dtype=jnp.float32)

    out = ssim_pallas(img1, img2)
    jax.block_until_ready(out)

    ref = ssim_ref(img1, img2)
    assert abs(float(out) - float(ref)) < 1e-4, (float(out), float(ref))
    print("KERNEL_OK")
</pallas_src>

<mosaic_0001>
module attributes {stable_mosaic.version = 11 : i64} {
  func.func @_ssim_kernel(%arg0: i32, %arg1: memref<16x16xf32, #tpu.memory_space<vmem>>, %arg2: memref<16x16xf32, #tpu.memory_space<vmem>>, %arg3: memref<4x64xf32, #tpu.memory_space<vmem>>, %arg4: memref<4x16x16xf32, #tpu.memory_space<vmem>>, %arg5: memref<4x16x16xf32, #tpu.memory_space<vmem>>, %arg6: memref<1x4x1xf32, #tpu.memory_space<vmem>>) attributes {dimension_semantics = [#tpu.dimension_semantics<parallel>], iteration_bounds = array<i64: 2>, scalar_prefetch = 0 : i64, scratch_operands = 0 : i64, tpu.core_type = #tpu.core_type<tc>, window_params = [{pipeline_mode = #tpu.pipeline_mode<synchronous>, transform_indices = @transform_0, window_bounds = array<i64: 16, 16>}, {pipeline_mode = #tpu.pipeline_mode<synchronous>, transform_indices = @transform_1, window_bounds = array<i64: 16, 16>}, {pipeline_mode = #tpu.pipeline_mode<synchronous>, transform_indices = @transform_2, window_bounds = array<i64: 4, 64>}, {transform_indices = @transform_3, window_bounds = array<i64: 4, 16, 16>}, {transform_indices = @transform_4, window_bounds = array<i64: 4, 16, 16>}, {transform_indices = @transform_5, window_bounds = array<i64: 1, 4, 1>}]} {
    %c0 = arith.constant 0 : index
    %c0_0 = arith.constant 0 : index
    %c0_1 = arith.constant 0 : index
    %0 = vector.load %arg4[%c0, %c0_0, %c0_1] : memref<4x16x16xf32, #tpu.memory_space<vmem>>, vector<4x16x16xf32>
    %1 = vector.shape_cast %0 : vector<4x16x16xf32> to vector<64x16xf32>
    %c0_2 = arith.constant 0 : index
    %c0_3 = arith.constant 0 : index
    %c0_4 = arith.constant 0 : index
    %2 = vector.load %arg5[%c0_2, %c0_3, %c0_4] : memref<4x16x16xf32, #tpu.memory_space<vmem>>, vector<4x16x16xf32>
    %3 = vector.shape_cast %2 : vector<4x16x16xf32> to vector<64x16xf32>
    %4 = arith.mulf %1, %1 : vector<64x16xf32>
    %5 = arith.mulf %3, %3 : vector<64x16xf32>
    %6 = arith.mulf %1, %3 : vector<64x16xf32>
    %7 = tpu.concatenate %1, %3, %4, %5, %6 in 0 : vector<64x16xf32>, vector<64x16xf32>, vector<64x16xf32>, vector<64x16xf32>, vector<64x16xf32> -> vector<320x16xf32>
    %c0_5 = arith.constant 0 : index
    %c0_6 = arith.constant 0 : index
    %8 = vector.load %arg1[%c0_5, %c0_6] : memref<16x16xf32, #tpu.memory_space<vmem>>, vector<16x16xf32>
    %cst = arith.constant dense<0.000000e+00> : vector<320x16xf32>
    %9 = tpu.matmul %7, %8, %cst {dimension_numbers = #tpu.dot_dimension_numbers<[1], [0], [0], [1], [0, 0, 1, 1], [], []>} : vector<320x16xf32>, vector<16x16xf32>, vector<320x16xf32> -> vector<320x16xf32>
    %10 = vector.shape_cast %9 : vector<320x16xf32> to vector<20x16x16xf32>
    %11 = tpu.transpose %10, [0, 2, 1] : vector<20x16x16xf32> -> vector<20x16x16xf32>
    %12 = vector.shape_cast %11 : vector<20x16x16xf32> to vector<320x16xf32>
    %c0_7 = arith.constant 0 : index
    %c0_8 = arith.constant 0 : index
    %13 = vector.load %arg2[%c0_7, %c0_8] : memref<16x16xf32, #tpu.memory_space<vmem>>, vector<16x16xf32>
    %cst_9 = arith.constant dense<0.000000e+00> : vector<320x16xf32>
    %14 = tpu.matmul %12, %13, %cst_9 {dimension_numbers = #tpu.dot_dimension_numbers<[1], [0], [0], [1], [0, 0, 1, 1], [], []>} : vector<320x16xf32>, vector<16x16xf32>, vector<320x16xf32> -> vector<320x16xf32>
    %15 = vector.extract_strided_slice %14 {offsets = [0, 0], sizes = [64, 16], strides = [1, 1]} : vector<320x16xf32> to vector<64x16xf32>
    %16 = vector.extract_strided_slice %14 {offsets = [64, 0], sizes = [64, 16], strides = [1, 1]} : vector<320x16xf32> to vector<64x16xf32>
    %17 = vector.extract_strided_slice %14 {offsets = [128, 0], sizes = [64, 16], strides = [1, 1]} : vector<320x16xf32> to vector<64x16xf32>
    %18 = vector.extract_strided_slice %14 {offsets = [192, 0], sizes = [64, 16], strides = [1, 1]} : vector<320x16xf32> to vector<64x16xf32>
    %19 = vector.extract_strided_slice %14 {offsets = [256, 0], sizes = [64, 16], strides = [1, 1]} : vector<320x16xf32> to vector<64x16xf32>
    %20 = arith.mulf %15, %15 : vector<64x16xf32>
    %21 = arith.mulf %16, %16 : vector<64x16xf32>
    %22 = arith.mulf %15, %16 : vector<64x16xf32>
    %23 = arith.subf %17, %20 : vector<64x16xf32>
    %24 = arith.subf %18, %21 : vector<64x16xf32>
    %25 = arith.subf %19, %22 : vector<64x16xf32>
    %cst_10 = arith.constant 2.000000e+00 : f32
    %26 = vector.broadcast %cst_10 : f32 to vector<64x16xf32>
    %27 = arith.mulf %26, %22 : vector<64x16xf32>
    %cst_11 = arith.constant 9.99999974E-5 : f32
    %28 = vector.broadcast %cst_11 : f32 to vector<64x16xf32>
    %29 = arith.addf %27, %28 : vector<64x16xf32>
    %cst_12 = arith.constant 2.000000e+00 : f32
    %30 = vector.broadcast %cst_12 : f32 to vector<64x16xf32>
    %31 = arith.mulf %30, %25 : vector<64x16xf32>
    %cst_13 = arith.constant 8.99999984E-4 : f32
    %32 = vector.broadcast %cst_13 : f32 to vector<64x16xf32>
    %33 = arith.addf %31, %32 : vector<64x16xf32>
    %34 = arith.mulf %29, %33 : vector<64x16xf32>
    %35 = arith.addf %20, %21 : vector<64x16xf32>
    %cst_14 = arith.constant 9.99999974E-5 : f32
    %36 = vector.broadcast %cst_14 : f32 to vector<64x16xf32>
    %37 = arith.addf %35, %36 : vector<64x16xf32>
    %38 = arith.addf %23, %24 : vector<64x16xf32>
    %cst_15 = arith.constant 8.99999984E-4 : f32
    %39 = vector.broadcast %cst_15 : f32 to vector<64x16xf32>
    %40 = arith.addf %38, %39 : vector<64x16xf32>
    %41 = arith.mulf %37, %40 : vector<64x16xf32>
    %42 = tpu.reciprocal %41 : vector<64x16xf32> -> vector<64x16xf32>
    %43 = arith.mulf %34, %42 : vector<64x16xf32>
    %cst_16 = arith.constant dense<0.000000e+00> : vector<64xf32>
    %44 = vector.multi_reduction <add>, %43, %cst_16 [1] : vector<64x16xf32> to vector<64xf32>
    %45 = vector.shape_cast %44 : vector<64xf32> to vector<64x1xf32>
    %c0_17 = arith.constant 0 : index
    %c0_18 = arith.constant 0 : index
    %46 = vector.load %arg3[%c0_17, %c0_18] : memref<4x64xf32, #tpu.memory_space<vmem>>, vector<4x64xf32>
    %cst_19 = arith.constant dense<0.000000e+00> : vector<4x1xf32>
    %47 = tpu.matmul %46, %45, %cst_19 {dimension_numbers = #tpu.dot_dimension_numbers<[1], [0], [0], [1], [0, 0, 1, 1], [], []>} : vector<4x64xf32>, vector<64x1xf32>, vector<4x1xf32> -> vector<4x1xf32>
    %48 = vector.shape_cast %47 : vector<4x1xf32> to vector<1x4x1xf32>
    %c0_20 = arith.constant 0 : index
    %c0_21 = arith.constant 0 : index
    %c0_22 = arith.constant 0 : index
    %49 = vector.load %arg6[%c0_20, %c0_21, %c0_22] : memref<1x4x1xf32, #tpu.memory_space<vmem>>, vector<1x4x1xf32>
    tpu.vector_store %arg6[%c0_20, %c0_21, %c0_22], %48 {strides = array<i32>} : memref<1x4x1xf32, #tpu.memory_space<vmem>>, vector<1x4x1xf32>,
    return
  }
  func.func @transform_0(%arg0: i32) -> (i32, i32) {
    %c0_i32 = arith.constant 0 : i32
    %c0_i32_0 = arith.constant 0 : i32
    %c0_i32_1 = arith.constant 0 : i32
    return %c0_i32, %c0_i32_0 : i32, i32
  }
  func.func @transform_1(%arg0: i32) -> (i32, i32) {
    %c0_i32 = arith.constant 0 : i32
    %c0_i32_0 = arith.constant 0 : i32
    %c0_i32_1 = arith.constant 0 : i32
    return %c0_i32, %c0_i32_0 : i32, i32
  }
  func.func @transform_2(%arg0: i32) -> (i32, i32) {
    %c0_i32 = arith.constant 0 : i32
    %c0_i32_0 = arith.constant 0 : i32
    %c0_i32_1 = arith.constant 0 : i32
    return %c0_i32, %c0_i32_0 : i32, i32
  }
  func.func @transform_3(%arg0: i32) -> (i32, i32, i32) {
    %c0_i32 = arith.constant 0 : i32
    %c0_i32_0 = arith.constant 0 : i32
    %c0_i32_1 = arith.constant 0 : i32
    return %arg0, %c0_i32, %c0_i32_0 : i32, i32, i32
  }
  func.func @transform_4(%arg0: i32) -> (i32, i32, i32) {
    %c0_i32 = arith.constant 0 : i32
    %c0_i32_0 = arith.constant 0 : i32
    %c0_i32_1 = arith.constant 0 : i32
    return %arg0, %c0_i32, %c0_i32_0 : i32, i32, i32
  }
  func.func @transform_5(%arg0: i32) -> (i32, i32, i32) {
    %c0_i32 = arith.constant 0 : i32
    %c0_i32_0 = arith.constant 0 : i32
    %c0_i32_1 = arith.constant 0 : i32
    return %arg0, %c0_i32, %c0_i32_0 : i32, i32, i32
  }
}

</mosaic_0001>

<bundles_post_ra>
// kernel: ssim_pallas.1
= control target key start
LH: loop header
LB: loop body
LE: loop exit
PB: predicated region body
PF: predicated region fallthrough
CT: control target
= control target key end

     0   :  { %10 = vsyncpa [#allocation3], 0  ;;  %s3002_s0 = inlined_call_operand.vmem [shape: f32[16,16], index: 0, kind: input, shape index: {}, may-alias: {0,1}]   ;;  %s3003_s1 = inlined_call_operand.vmem [shape: f32[16,16], index: 1, kind: input, shape index: {}, may-alias: {0,1}]   ;;  %s3004_s2 = inlined_call_operand.vmem [shape: f32[4,64], index: 2, kind: input, shape index: {}]   ;;  %s3005_s3 = inlined_call_operand.hbm [shape: f32[8,16,16], index: 3, kind: input, shape index: {}]   ;;  %s3006_s4 = inlined_call_operand.hbm [shape: f32[8,16,16], index: 4, kind: input, shape index: {}]   ;;  %s3007_s5 = inlined_call_operand.vmem [shape: f32[2,4,1], index: 5, kind: output, shape index: {}]  }
   0x1   :  { %12 = vsyncpa [#allocation3 + $0x1], 0 }
   0x2   :  { %13 = vsyncpa [#allocation5], 0 }
   0x3   :  { %15 = vsyncpa [#allocation5 + $0x1], 0  ;;  %s2639_s18 = smov 0   ;;  %s2641_s19 = smov 0  }
   0x4   :  { %s2643_s20 = smov 0   ;;  %s2645_s21 = smov 0  }
   0x5 LB: > { %s2658_s22 = sadd.s32 4294967295, %s2600_s21   ;;  %s2661_s23 = sadd.s32 1, %s2600_s21   ;;  %s2600_s21 = sphi %s2645_s21, %s3017_s21   ;;  %s2596_s20 = sphi %s2643_s20, %s3016_s20   ;;  %s2592_s19 = sphi %s2641_s19, %s3015_s19   ;;  %s2588_s18 = sphi %s2639_s18, %s3014_s18  }
   0x6   : > { %s88_s24 = ssub.s32 %s2600_s21, %s2661_s23  ;;  %s91_s25 = sadd.s32 1, %s2596_s20 }
   0x7   : > { %p89_p0 = scmp.eq.s32.totalorder %s88_s24, 0  ;;  %p98_p1 = scmp.ne.s32.totalorder %s2596_s20, %s2592_s19 }
   0x8   : > { %p99_p2 = scmp.eq.s32.totalorder %s2600_s21, 0  ;;  %p104_p3 = scmp.ne.s32.totalorder %s2592_s19, %s2588_s18 }
   0x9   : > { %s2671_s26 = scalar_select %p89_p0, %s2596_s20, %s91_s25  }
   0xa   : > { %p100_p4 = por %p99_p2, %p98_p1  ;;  %p105_p5 = scmp.eq.s32.totalorder %s2658_s22, 0 }
   0xb   : > { %p2448_p6 = scmp.lt.s32.totalorder %s2600_s21, 2  ;;  %s2680_s28 = sand.u32 1, %s2596_s20  }
   0xc   : > { %p2675_p7 = por %p105_p5, %p104_p3  ;;  %s2078_s29 = sshll.u32 %s2680_s28, 6 }
   0xd   : > { %s2174_s30 = sshll.u32 %s2600_s21, 10  ;;  %s193_s9 = scalar_lea.vmem [#allocation2], %s2078_s29 }
   0xe   : > { %s3009_s27 = scalar_select %p2675_p7, 1, 0 }
   0xf   : > { %s2689_s8 = scalar_lea.hbm %s3005_s3, %s2174_s30  ;;  %s201_s10 = sshll.u32 %s193_s9, 4  ;;  %s2693_s10 = int_to_ptr.vmem [resolvable:$true] %s201_s10 }
  0x10   : > { %p2695_p8 = pnand %p2448_p6, %p100_p4  ;;  %s190_s12 = scalar_lea.sflag [#allocation3], %s2680_s28 }
  0x11   : > { %s2502_s13 = scalar_lea.hbm %s2689_s8, 1024  ;;  %s2507_s16 = scalar_lea.hbm %s3005_s3, 2048 }
  0x12   : > { %p2503_p10 = scmp.ne.s32.totalorder %s2689_s8, %s2502_s13  ;;  %p2504_p11 = pneg %p2695_p8 }
  0x13   : > { %p2508_p0 = scmp.lt.u32.totalorder %s2689_s8, %s3005_s3  ;;  %p2509_p1 = scmp.lt.u32.totalorder %s2507_s16, %s2502_s13 }
  0x14   : > { %p2505_p12 = pnand %p2504_p11, %p2503_p10  ;;  %p2511_p3 = scmp.lt.u32.totalorder %s2502_s13, %s2689_s8 }
  0x15   : > { %p2510_p2 = por %p2509_p1, %p2508_p0 }
  0x16   : > { %p2506_p13 = pneg %p2505_p12 }
  0x17   : > { %p2512_p4 = por %p2511_p3, %p2510_p2 }
  0x19   : > { %p2513_p5 = pnand %p2512_p4, %p2506_p13 }
  0x1b   : > { %2516 = shalt.err (!%p2513_p5)
}
  0x1c   : > { %s2517_s24 = scalar_lea.vmem %s2693_s10, 1024  ;;  %s2602_s25 = smov [#allocation2]  }
  0x1d   : > { %p2518_p6 = scmp.ne.s32.totalorder %s2693_s10, %s2517_s24  ;;  %s2522_s6 = sshll.u32 %s2602_s25, 4  ;;  %s2523_s6 = int_to_ptr.vmem [resolvable:$false] %s2522_s6 }
  0x1e   : > { %s2524_s7 = scalar_lea.vmem %s2523_s6, 2048  ;;  %p2525_p9 = scmp.lt.s32.totalorder %s2693_s10, %s2523_s6 }
  0x1f   : > { %p2520_p10 = pnand %p2518_p6, %p2504_p11  ;;  %p2526_p0 = scmp.lt.s32.totalorder %s2524_s7, %s2517_s24 }
  0x21   : > { %p2521_p12 = pneg %p2520_p10  ;;  %p2527_p1 = por %p2526_p0, %p2525_p9 }
  0x23   : > { %p2528_p2 = pnand %p2527_p1, %p2521_p12 }
  0x25   : > { %2531 = shalt.err (!%p2528_p2)
}
  0x26   : > { %s2603_s9 = smov 128   ;;  %s2604_s13 = smov 8  }
  0x27   : > { %2444 = dma.hbm_to_vmem [thread:$0]  (!%p2695_p8), %s2689_s8, 1024, %s2693_s10, %s190_s12, %s2603_s9, %s2603_s9, %s2604_s13  }
  0x28   : > { %p231_p9 = scmp.lt.s32.totalorder %s2600_s21, 3  ;;  %s2737_s16 = scalar_lea.hbm %s3006_s4, %s2174_s30 }
  0x29   : > { %p3011_p13 = scmp.ge.s32.totalorder %s2600_s21, 1  ;;  %s215_s18 = scalar_lea.vmem [#allocation4], %s2078_s29 }
  0x2a   : > { %s223_s24 = sshll.u32 %s215_s18, 4  ;;  %s212_s8 = scalar_lea.sflag [#allocation5], %s2680_s28  ;;  %s2747_s24 = int_to_ptr.vmem [resolvable:$true] %s223_s24 }
  0x2b   : > { %p2741_p3 = pnand %p3011_p13, %p231_p9  ;;  %s2532_s10 = scalar_lea.hbm %s2737_s16, 1024 }
  0x2c   : > { %p2533_p4 = scmp.ne.s32.totalorder %s2737_s16, %s2532_s10  ;;  %s2537_s12 = scalar_lea.hbm %s3006_s4, 2048 }
  0x2d   : > { %p2538_p10 = scmp.lt.u32.totalorder %s2737_s16, %s3006_s4  ;;  %p2539_p12 = scmp.lt.u32.totalorder %s2537_s12, %s2532_s10 }
  0x2e   : > { %p2535_p5 = pnand %p2533_p4, %p2504_p11  ;;  %p2541_p1 = scmp.lt.u32.totalorder %s2532_s10, %s2737_s16 }
  0x2f   : > { %p2540_p0 = por %p2539_p12, %p2538_p10 }
  0x30   : > { %p2536_p6 = pneg %p2535_p5 }
  0x31   : > { %p2542_p2 = por %p2541_p1, %p2540_p0 }
  0x33   : > { %p2543_p9 = pnand %p2542_p2, %p2536_p6 }
  0x35   : > { %2546 = shalt.err (!%p2543_p9)
}
  0x36   : > { %s2547_s29 = scalar_lea.vmem %s2747_s24, 1024  ;;  %s2605_s7 = smov [#allocation4]  }
  0x37   : > { %p2548_p13 = scmp.ne.s32.totalorder %s2747_s24, %s2547_s29  ;;  %s2552_s14 = sshll.u32 %s2605_s7, 4  ;;  %s2553_s14 = int_to_ptr.vmem [resolvable:$false] %s2552_s14 }
  0x38   : > { %s2554_s15 = scalar_lea.vmem %s2553_s14, 2048  ;;  %p2555_p7 = scmp.lt.s32.totalorder %s2747_s24, %s2553_s14 }
  0x39   : > { %p2550_p4 = pnand %p2548_p13, %p2504_p11  ;;  %p2556_p10 = scmp.lt.s32.totalorder %s2554_s15, %s2547_s29 }
  0x3b   : > { %p2551_p5 = pneg %p2550_p4  ;;  %p2557_p12 = por %p2556_p10, %p2555_p7 }
  0x3d   : > { %p2558_p0 = pnand %p2557_p12, %p2551_p5 }
  0x3f   : > { %2561 = shalt.err (!%p2558_p0)
}
  0x40   : > { %2447 = dma.hbm_to_vmem [thread:$0]  (!%p2695_p8), %s2737_s16, 1024, %s2747_s24, %s212_s8, %s2603_s9, %s2603_s9, %s2604_s13  }
  0x41   : > { %235 = sbr.rel (%p2741_p3) target bundleno = 1091 (0x443), region = 40  ;;  %s237_s18 = sand.u32 (!%p2741_p3), 1, %s2592_s19  }
  0x42   : > { %s2087_s10 = sshll.u32 (!%p2741_p3), %s237_s18, 6  ;;  %s238_s21 = scalar_lea.sflag (!%p2741_p3), [#allocation3], %s237_s18 }
  0x43   : > { %s241_s30 = scalar_lea.vmem (!%p2741_p3), [#allocation2], %s2087_s10  ;;  %p3013_p7 = scmp.ne.s32.totalorder (!%p2741_p3), %s3009_s27, 0 }
  0x48   : > { %2579 = dma.done.wait (%p3013_p7), %s238_s21, 1024  }
  0x49   : > { %2581 = vsyncadd (%p3013_p7), %s238_s21, 4294966272  ;;  %s247_s11 = scalar_lea.sflag [#allocation5], %s237_s18  ;;  %s2785_s28 = scalar_lea.vmem [#allocation4], %s2087_s10 }
  0x4a   : > { %2583 = dma.done.wait (%p3013_p7), %s247_s11, 1024  }
  0x4b   : > { %2585 = vsyncadd (%p3013_p7), %s247_s11, 4294966272  ;;  %vm329_vm0 = vcmask 130048   ;;  %v327_v0 = vld [vmem:[%s3002_s0] sm:$0xff]  ;;  %v328_v1 = vld [vmem:[%s3002_s0 + $0x8] sm:$0xff]  ;;  %vm2607_vm1 = vmmov 0   ;;  %vm1911_vm2 = vcmask 523264  }
  0x4c   : > { %v2797_v2 = vld [vmem:[%s241_s30] sm:$0xff]  ;;  %v2417_v3 = vpack.c.bf16 %v328_v1, %v327_v0  ;;  %v288_v4 = vld [vmem:[%s241_s30 + $0x8] sm:$0xff]  ;;  %v2801_v5 = vld [vmem:[%s241_s30 + $0x10] sm:$0xff]  ;;  %p283_p8 = scmp.lt.s32.totalorder %s2658_s22, 1  ;;  %vm1985_vm3 = vcmask 3072  }
  0x4d   : > { %2274 = vmatprep.mubr.msk.f32.mxu0 %vm329_vm0, %v2797_v2  ;;  %v290_v6 = vld [vmem:[%s241_s30 + $0x18] sm:$0xff]  ;;  %v2806_v7 = vld [vmem:[%s241_s30 + $0x20] sm:$0xff]  ;;  %v292_v8 = vld [vmem:[%s241_s30 + $0x28] sm:$0xff]  ;;  %v303_v18 = vmul.f32 %v2797_v2, %v2797_v2  ;;  %v304_v20 = vmul.f32 %v288_v4, %v288_v4  ;;  %v305_v21 = vmul.f32 %v2801_v5, %v2801_v5 }
  0x4e   : > { %2418 = vmatprep.subr.bf16.mxu0 %v2417_v3  ;;  %v2811_v9 = vld [vmem:[%s241_s30 + $0x30] sm:$0xff]  ;;  %v294_v10 = vld [vmem:[%s241_s30 + $0x38] sm:$0xff]  ;;  %v295_v11 = vld [vmem:[%s2785_s28] sm:$0xff]  ;;  %v306_v22 = vmul.f32 %v290_v6, %v290_v6  ;;  %v307_v23 = vmul.f32 %v2806_v7, %v2806_v7  ;;  %v308_v24 = vmul.f32 %v292_v8, %v292_v8  ;;  %s3019_s22 = smov (!%p283_p8, %s2658_s22), 1 }
  0x4f   : > { %2420 = vmatpush3.bf16.msra.mxu0 %v2417_v3  ;;  %v296_v12 = vld [vmem:[%s2785_s28 + $0x8] sm:$0xff]  ;;  %v297_v13 = vld [vmem:[%s2785_s28 + $0x10] sm:$0xff]  ;;  %v298_v14 = vld [vmem:[%s2785_s28 + $0x18] sm:$0xff]  ;;  %v309_v25 = vmul.f32 %v2811_v9, %v2811_v9  ;;  %v310_v26 = vmul.f32 %v294_v10, %v294_v10  ;;  %v311_v27 = vmul.f32 %v295_v11, %v295_v11  ;;  %v319_v35 = vmul.f32 %v295_v11, %v2797_v2  ;;  %s2089_s29 = sshll.u32 %s3019_s22, 2 }
  0x50   : > { %v299_v15 = vld [vmem:[%s2785_s28 + $0x20] sm:$0xff]  ;;  %v300_v16 = vld [vmem:[%s2785_s28 + $0x28] sm:$0xff]  ;;  %v301_v17 = vld [vmem:[%s2785_s28 + $0x30] sm:$0xff]  ;;  %v312_v28 = vmul.f32 %v296_v12, %v296_v12  ;;  %v313_v29 = vmul.f32 %v297_v13, %v297_v13  ;;  %v314_v30 = vmul.f32 %v298_v14, %v298_v14  ;;  %v320_v36 = vmul.f32 %v296_v12, %v288_v4  ;;  %s286_s15 = scalar_lea.vmem %s3007_s5, %s2089_s29 }
  0x51   : > { %v302_v19 = vld [vmem:[%s2785_s28 + $0x38] sm:$0xff]  ;;  %v315_v31 = vmul.f32 %v299_v15, %v299_v15  ;;  %v316_v32 = vmul.f32 %v300_v16, %v300_v16  ;;  %v317_v33 = vmul.f32 %v301_v17, %v301_v17  ;;  %v321_v37 = vmul.f32 %v297_v13, %v2801_v5  ;;  %v1355_v44 = vld [vmem:[%s3003_s1] sm:$0xff]  ;;  %v1356_v45 = vld [vmem:[%s3003_s1 + $0x8] sm:$0xff] }
  0x52   : > { %2275 = vmatmul.mubr.msk.f32.vlgmr.msra.gmra.mrb[0].mxu0 %vm329_vm0, %v288_v4  ;;  %v318_v34 = vmul.f32 %v302_v19, %v302_v19  ;;  %v322_v38 = vmul.f32 %v298_v14, %v290_v6  ;;  %v323_v39 = vmul.f32 %v299_v15, %v2806_v7  ;;  %v324_v40 = vmul.f32 %v300_v16, %v292_v8 }
  0x53   : > { %2277 = vmatprep.mubr.msk.f32.mxu0 %vm329_vm0, %v2801_v5  ;;  %v325_v41 = vmul.f32 %v301_v17, %v2811_v9  ;;  %v326_v42 = vmul.f32 %v302_v19, %v294_v10  ;;  %v2421_v47 = vpack.c.bf16 %v1356_v45, %v1355_v44 }
  0x55   : > { %2422 = vmatprep.subr.bf16.mxu1 %v2421_v47 }
  0x56   : > { %2278 = vmatmul.mubr.msk.f32.gmra.mrb[2].mxu0 %vm329_vm0, %v290_v6  ;;  %2424 = vmatpush3.bf16.msra.mxu1 %v2421_v47 }
  0x57   : > { %2280 = vmatprep.mubr.msk.f32.mxu0 %vm329_vm0, %v2806_v7 }
  0x5a   : > { %2281 = vmatmul.mubr.msk.f32.gmra.mrb[4].mxu0 %vm329_vm0, %v292_v8 }
  0x5b   : > { %2283 = vmatprep.mubr.msk.f32.mxu0 %vm329_vm0, %v2811_v9 }
  0x5e   : > { %2284 = vmatmul.mubr.msk.f32.gmra.mrb[6].mxu0 %vm329_vm0, %v294_v10 }
  0x5f   : > { %2286 = vmatprep.mubr.msk.f32.mxu0 %vm329_vm0, %v295_v11 }
  0x62   : > { %2287 = vmatmul.mubr.msk.f32.gmra.mrb[8].mxu0 %vm329_vm0, %v296_v12 }
  0x63   : > { %2289 = vmatprep.mubr.msk.f32.mxu0 %vm329_vm0, %v297_v13 }
  0x66   : > { %2290 = vmatmul.mubr.msk.f32.gmra.mrb[10].mxu0 %vm329_vm0, %v298_v14 }
  0x67   : > { %2292 = vmatprep.mubr.msk.f32.mxu0 %vm329_vm0, %v299_v15 }
  0x6a   : > { %2293 = vmatmul.mubr.msk.f32.gmra.mrb[12].mxu0 %vm329_vm0, %v300_v16 }
  0x6b   : > { %2295 = vmatprep.mubr.msk.f32.mxu0 %vm329_vm0, %v301_v17 }
  0x6e   : > { %2296 = vmatmul.mubr.msk.f32.gmra.mrb[14].mxu0 %vm329_vm0, %v302_v19 }
  0x6f   : > { %2298 = vmatprep.mubr.msk.f32.mxu0 %vm329_vm0, %v303_v18 }
  0x72   : > { %2299 = vmatmul.mubr.msk.f32.gmra.mrb[16].mxu0 %vm329_vm0, %v304_v20 }
  0x73   : > { %2301 = vmatprep.mubr.msk.f32.mxu0 %vm329_vm0, %v305_v21 }
  0x76   : > { %2302 = vmatmul.mubr.msk.f32.gmra.mrb[18].mxu0 %vm329_vm0, %v306_v22 }
  0x77   : > { %2304 = vmatprep.mubr.msk.f32.mxu0 %vm329_vm0, %v307_v23 }
  0x7a   : > { %2305 = vmatmul.mubr.msk.f32.gmra.mrb[20].mxu0 %vm329_vm0, %v308_v24 }
  0x7b   : > { %2307 = vmatprep.mubr.msk.f32.mxu0 %vm329_vm0, %v309_v25 }
  0x7e   : > { %2308 = vmatmul.mubr.msk.f32.gmra.mrb[22].mxu0 %vm329_vm0, %v310_v26 }
  0x7f   : > { %2310 = vmatprep.mubr.msk.f32.mxu0 %vm329_vm0, %v311_v27 }
  0x82   : > { %2311 = vmatmul.mubr.msk.f32.gmra.mrb[24].mxu0 %vm329_vm0, %v312_v28 }
  0x83   : > { %2313 = vmatprep.mubr.msk.f32.mxu0 %vm329_vm0, %v313_v29 }
  0x86   : > { %2314 = vmatmul.mubr.msk.f32.gmra.mrb[26].mxu0 %vm329_vm0, %v314_v30 }
  0x87   : > { %2316 = vmatprep.mubr.msk.f32.mxu0 %vm329_vm0, %v315_v31 }
  0x8a   : > { %2317 = vmatmul.mubr.msk.f32.gmra.mrb[28].mxu0 %vm329_vm0, %v316_v32 }
  0x8b   : > { %2319 = vmatprep.mubr.msk.f32.mxu0 %vm329_vm0, %v317_v33 }
  0x8e   : > { %2320 = vmatmul.mubr.msk.f32.gmra.mrb[30].mxu0 %vm329_vm0, %v318_v34 }
  0x8f   : > { %2322 = vmatprep.mubr.msk.f32.mxu0 %vm329_vm0, %v319_v35 }
  0x92   : > { %2323 = vmatmul.mubr.msk.f32.gmra.mrb[32].mxu0 %vm329_vm0, %v320_v36 }
  0x93   : > { %2325 = vmatprep.mubr.msk.f32.mxu0 %vm329_vm0, %v321_v37 }
  0x96   : > { %2326 = vmatmul.mubr.msk.f32.gmra.mrb[34].mxu0 %vm329_vm0, %v322_v38 }
  0x97   : > { %2328 = vmatprep.mubr.msk.f32.mxu0 %vm329_vm0, %v323_v39 }
  0x9a   : > { %2329 = vmatmul.mubr.msk.f32.gmra.mrb[36].mxu0 %vm329_vm0, %v324_v40 }
  0x9b   : > { %2331 = vmatprep.mubr.msk.f32.mxu0 %vm329_vm0, %v325_v41 }
  0x9e   : > { %2332 = vmatmul.mubr.msk.f32.gmra.mrb[38].mxu0 %vm329_vm0, %v326_v42 }
 0x125   : > { %v2276_v43 = vpop.f32.mrb[0].mxu0 }
 0x126   : > { %v516_v46 = vpop.f32.mrb[1].mxu0 }
 0x127   : > { %715 = vxpose.xlu0.b32.start [1/2] (short) (narrow) %v516_v46, 16 }
 0x129   : > { %v2279_v48 = vpop.f32.mrb[2].mxu0 }
 0x12a   : > { %v526_v49 = vpop.f32.mrb[3].mxu0 }
 0x12b   : > { %716 = vxpose.xlu0.b32.end [2/2] (short) (narrow) %v2276_v43, 16  ;;  %747 = vxpose.xlu1.b32.start [1/2] (short) (narrow) %v526_v49, 16 }
 0x12d   : > { %v2282_v50 = vpop.f32.mrb[4].mxu0 }
 0x12e   : > { %v536_v51 = vpop.f32.mrb[5].mxu0 }
 0x12f   : > { %748 = vxpose.xlu1.b32.end [2/2] (short) (narrow) %v2279_v48, 16  ;;  %779 = vxpose.xlu0.b32.start [1/2] (short) (narrow) %v536_v51, 16 }
 0x131   : > { %v2285_v52 = vpop.f32.mrb[6].mxu0 }
 0x132   : > { %v546_v53 = vpop.f32.mrb[7].mxu0 }
 0x133   : > { %780 = vxpose.xlu0.b32.end [2/2] (short) (narrow) %v2282_v50, 16  ;;  %811 = vxpose.xlu1.b32.start [1/2] (short) (narrow) %v546_v53, 16 }
 0x135   : > { %v2288_v54 = vpop.f32.mrb[8].mxu0 }
 0x136   : > { %v556_v55 = vpop.f32.mrb[9].mxu0 }
 0x137   : > { %812 = vxpose.xlu1.b32.end [2/2] (short) (narrow) %v2285_v52, 16  ;;  %843 = vxpose.xlu0.b32.start [1/2] (short) (narrow) %v556_v55, 16 }
 0x139   : > { %v2291_v56 = vpop.f32.mrb[10].mxu0 }
 0x13a   : > { %v566_v57 = vpop.f32.mrb[11].mxu0 }
 0x13b   : > { %844 = vxpose.xlu0.b32.end [2/2] (short) (narrow) %v2288_v54, 16  ;;  %875 = vxpose.xlu1.b32.start [1/2] (short) (narrow) %v566_v57, 16 }
 0x13d   : > { %v2294_v58 = vpop.f32.mrb[12].mxu0 }
 0x13e   : > { %v576_v59 = vpop.f32.mrb[13].mxu0 }
 0x13f   : > { %876 = vxpose.xlu1.b32.end [2/2] (short) (narrow) %v2291_v56, 16  ;;  %907 = vxpose.xlu0.b32.start [1/2] (short) (narrow) %v576_v59, 16 }
 0x141   : > { %v2297_v60 = vpop.f32.mrb[14].mxu0 }
 0x142   : > { %v586_v61 = vpop.f32.mrb[15].mxu0 }
 0x143   : > { %908 = vxpose.xlu0.b32.end [2/2] (short) (narrow) %v2294_v58, 16  ;;  %939 = vxpose.xlu1.b32.start [1/2] (short) (narrow) %v586_v61, 16 }
 0x145   : > { %v2300_v62 = vpop.f32.mrb[16].mxu0 }
 0x146   : > { %v596_v63 = vpop.f32.mrb[17].mxu0 }
 0x147   : > { %940 = vxpose.xlu1.b32.end [2/2] (short) (narrow) %v2297_v60, 16  ;;  %971 = vxpose.xlu0.b32.start [1/2] (short) (narrow) %v596_v63, 16 }
 0x149   : > { %v2303_v0 = vpop.f32.mrb[18].mxu0 }
 0x14a   : > { %v606_v1 = vpop.f32.mrb[19].mxu0 }
 0x14b   : > { %972 = vxpose.xlu0.b32.end [2/2] (short) (narrow) %v2300_v62, 16  ;;  %1003 = vxpose.xlu1.b32.start [1/2] (short) (narrow) %v606_v1, 16 }
 0x14d   : > { %v2306_v2 = vpop.f32.mrb[20].mxu0 }
 0x14e   : > { %v616_v3 = vpop.f32.mrb[21].mxu0 }
 0x14f   : > { %1004 = vxpose.xlu1.b32.end [2/2] (short) (narrow) %v2303_v0, 16  ;;  %1035 = vxpose.xlu0.b32.start [1/2] (short) (narrow) %v616_v3, 16 }
 0x151   : > { %v2309_v4 = vpop.f32.mrb[22].mxu0 }
 0x152   : > { %v626_v5 = vpop.f32.mrb[23].mxu0 }
 0x153   : > { %1036 = vxpose.xlu0.b32.end [2/2] (short) (narrow) %v2306_v2, 16  ;;  %1067 = vxpose.xlu1.b32.start [1/2] (short) (narrow) %v626_v5, 16 }
 0x155   : > { %v2312_v6 = vpop.f32.mrb[24].mxu0 }
 0x156   : > { %v636_v7 = vpop.f32.mrb[25].mxu0 }
 0x157   : > { %1068 = vxpose.xlu1.b32.end [2/2] (short) (narrow) %v2309_v4, 16  ;;  %1099 = vxpose.xlu0.b32.start [1/2] (short) (narrow) %v636_v7, 16 }
 0x159   : > { %v2315_v8 = vpop.f32.mrb[26].mxu0 }
 0x15a   : > { %v646_v9 = vpop.f32.mrb[27].mxu0 }
 0x15b   : > { %1100 = vxpose.xlu0.b32.end [2/2] (short) (narrow) %v2312_v6, 16  ;;  %1131 = vxpose.xlu1.b32.start [1/2] (short) (narrow) %v646_v9, 16 }
 0x15d   : > { %v2318_v10 = vpop.f32.mrb[28].mxu0 }
 0x15e   : > { %v656_v11 = vpop.f32.mrb[29].mxu0 }
 0x15f   : > { %1132 = vxpose.xlu1.b32.end [2/2] (short) (narrow) %v2315_v8, 16  ;;  %1163 = vxpose.xlu0.b32.start [1/2] (short) (narrow) %v656_v11, 16 }
 0x161   : > { %v2321_v12 = vpop.f32.mrb[30].mxu0 }
 0x162   : > { %v666_v13 = vpop.f32.mrb[31].mxu0 }
 0x163   : > { %1164 = vxpose.xlu0.b32.end [2/2] (short) (narrow) %v2318_v10, 16  ;;  %1195 = vxpose.xlu1.b32.start [1/2] (short) (narrow) %v666_v13, 16 }
 0x165   : > { %v2324_v14 = vpop.f32.mrb[32].mxu0 }
 0x166   : > { %v676_v15 = vpop.f32.mrb[33].mxu0 }
 0x167   : > { %1196 = vxpose.xlu1.b32.end [2/2] (short) (narrow) %v2321_v12, 16  ;;  %1227 = vxpose.xlu0.b32.start [1/2] (short) (narrow) %v676_v15, 16 }
 0x169   : > { %v2327_v16 = vpop.f32.mrb[34].mxu0 }
 0x16a   : > { %v686_v17 = vpop.f32.mrb[35].mxu0 }
 0x16b   : > { %1228 = vxpose.xlu0.b32.end [2/2] (short) (narrow) %v2324_v14, 16  ;;  %1259 = vxpose.xlu1.b32.start [1/2] (short) (narrow) %v686_v17, 16 }
 0x16d   : > { %v2330_v18 = vpop.f32.mrb[36].mxu0 }
 0x16e   : > { %v696_v19 = vpop.f32.mrb[37].mxu0 }
 0x16f   : > { %1260 = vxpose.xlu1.b32.end [2/2] (short) (narrow) %v2327_v16, 16  ;;  %1291 = vxpose.xlu0.b32.start [1/2] (short) (narrow) %v696_v19, 16 }
 0x171   : > { %v2333_v20 = vpop.f32.mrb[38].mxu0 }
 0x172   : > { %v706_v21 = vpop.f32.mrb[39].mxu0 }
 0x173   : > { %1292 = vxpose.xlu0.b32.end [2/2] (short) (narrow) %v2330_v18, 16  ;;  %1323 = vxpose.xlu1.b32.start [1/2] (short) (narrow) %v706_v21, 16 }
 0x177   : > { %1324 = vxpose.xlu1.b32.end [2/2] (short) (narrow) %v2333_v20, 16 }
 0x1a7   : > { %v731_v22 = vpop.trf.xlu0 }
 0x1a8   : > { %2338 = vmatprep.mubr.msk.f32.mxu1 %vm329_vm0, %v731_v22 }
 0x1ab   : > { %v732_v23 = vpop.trf.xlu0  ;;  %v763_v24 = vpop.trf.xlu1 }
 0x1ac   : > { %2339 = vmatmul.mubr.msk.f32.vlgmr.msra.gmra.mrb[0].mxu1 %vm329_vm0, %v732_v23 }
 0x1ad   : > { %2341 = vmatprep.mubr.msk.f32.mxu1 %vm329_vm0, %v763_v24 }
 0x1af   : > { %v764_v25 = vpop.trf.xlu1  ;;  %v795_v26 = vpop.trf.xlu0 }
 0x1b0   : > { %2342 = vmatmul.mubr.msk.f32.gmra.mrb[2].mxu1 %vm329_vm0, %v764_v25 }
 0x1b1   : > { %2344 = vmatprep.mubr.msk.f32.mxu1 %vm329_vm0, %v795_v26 }
 0x1b3   : > { %v796_v27 = vpop.trf.xlu0  ;;  %v827_v28 = vpop.trf.xlu1 }
 0x1b4   : > { %2345 = vmatmul.mubr.msk.f32.gmra.mrb[4].mxu1 %vm329_vm0, %v796_v27 }
 0x1b5   : > { %2347 = vmatprep.mubr.msk.f32.mxu1 %vm329_vm0, %v827_v28 }
 0x1b7   : > { %v828_v29 = vpop.trf.xlu1  ;;  %v859_v30 = vpop.trf.xlu0 }
 0x1b8   : > { %2348 = vmatmul.mubr.msk.f32.gmra.mrb[6].mxu1 %vm329_vm0, %v828_v29 }
 0x1b9   : > { %2350 = vmatprep.mubr.msk.f32.mxu1 %vm329_vm0, %v859_v30 }
 0x1bb   : > { %v860_v31 = vpop.trf.xlu0  ;;  %v891_v32 = vpop.trf.xlu1 }
 0x1bc   : > { %2351 = vmatmul.mubr.msk.f32.gmra.mrb[8].mxu1 %vm329_vm0, %v860_v31 }
 0x1bd   : > { %2353 = vmatprep.mubr.msk.f32.mxu1 %vm329_vm0, %v891_v32 }
 0x1bf   : > { %v892_v33 = vpop.trf.xlu1  ;;  %v923_v34 = vpop.trf.xlu0 }
 0x1c0   : > { %2354 = vmatmul.mubr.msk.f32.gmra.mrb[10].mxu1 %vm329_vm0, %v892_v33 }
 0x1c1   : > { %2356 = vmatprep.mubr.msk.f32.mxu1 %vm329_vm0, %v923_v34 }
 0x1c3   : > { %v924_v35 = vpop.trf.xlu0  ;;  %v955_v36 = vpop.trf.xlu1 }
 0x1c4   : > { %2357 = vmatmul.mubr.msk.f32.gmra.mrb[12].mxu1 %vm329_vm0, %v924_v35 }
 0x1c5   : > { %2359 = vmatprep.mubr.msk.f32.mxu1 %vm329_vm0, %v955_v36 }
 0x1c7   : > { %v956_v37 = vpop.trf.xlu1  ;;  %v987_v38 = vpop.trf.xlu0 }
 0x1c8   : > { %2360 = vmatmul.mubr.msk.f32.gmra.mrb[14].mxu1 %vm329_vm0, %v956_v37 }
 0x1c9   : > { %2362 = vmatprep.mubr.msk.f32.mxu1 %vm329_vm0, %v987_v38 }
 0x1cb   : > { %v988_v39 = vpop.trf.xlu0  ;;  %v1019_v40 = vpop.trf.xlu1 }
 0x1cc   : > { %2363 = vmatmul.mubr.msk.f32.gmra.mrb[16].mxu1 %vm329_vm0, %v988_v39 }
 0x1cd   : > { %2365 = vmatprep.mubr.msk.f32.mxu1 %vm329_vm0, %v1019_v40 }
 0x1cf   : > { %v1020_v41 = vpop.trf.xlu1  ;;  %v1051_v42 = vpop.trf.xlu0 }
 0x1d0   : > { %2366 = vmatmul.mubr.msk.f32.gmra.mrb[18].mxu1 %vm329_vm0, %v1020_v41 }
 0x1d1   : > { %2368 = vmatprep.mubr.msk.f32.mxu1 %vm329_vm0, %v1051_v42 }
 0x1d3   : > { %v1052_v43 = vpop.trf.xlu0  ;;  %v1083_v44 = vpop.trf.xlu1 }
 0x1d4   : > { %2369 = vmatmul.mubr.msk.f32.gmra.mrb[20].mxu1 %vm329_vm0, %v1052_v43 }
 0x1d5   : > { %2371 = vmatprep.mubr.msk.f32.mxu1 %vm329_vm0, %v1083_v44 }
 0x1d7   : > { %v1084_v45 = vpop.trf.xlu1  ;;  %v1115_v46 = vpop.trf.xlu0 }
 0x1d8   : > { %2372 = vmatmul.mubr.msk.f32.gmra.mrb[22].mxu1 %vm329_vm0, %v1084_v45 }
 0x1d9   : > { %2374 = vmatprep.mubr.msk.f32.mxu1 %vm329_vm0, %v1115_v46 }
 0x1db   : > { %v1116_v47 = vpop.trf.xlu0  ;;  %v1147_v48 = vpop.trf.xlu1 }
 0x1dc   : > { %2375 = vmatmul.mubr.msk.f32.gmra.mrb[24].mxu1 %vm329_vm0, %v1116_v47 }
 0x1dd   : > { %2377 = vmatprep.mubr.msk.f32.mxu1 %vm329_vm0, %v1147_v48 }
 0x1df   : > { %v1148_v49 = vpop.trf.xlu1  ;;  %v1179_v50 = vpop.trf.xlu0 }
 0x1e0   : > { %2378 = vmatmul.mubr.msk.f32.gmra.mrb[26].mxu1 %vm329_vm0, %v1148_v49 }
 0x1e1   : > { %2380 = vmatprep.mubr.msk.f32.mxu1 %vm329_vm0, %v1179_v50 }
 0x1e3   : > { %v1180_v51 = vpop.trf.xlu0  ;;  %v1211_v52 = vpop.trf.xlu1 }
 0x1e4   : > { %2381 = vmatmul.mubr.msk.f32.gmra.mrb[28].mxu1 %vm329_vm0, %v1180_v51 }
 0x1e5   : > { %2383 = vmatprep.mubr.msk.f32.mxu1 %vm329_vm0, %v1211_v52 }
 0x1e7   : > { %v1212_v53 = vpop.trf.xlu1  ;;  %v1243_v54 = vpop.trf.xlu0 }
 0x1e8   : > { %2384 = vmatmul.mubr.msk.f32.gmra.mrb[30].mxu1 %vm329_vm0, %v1212_v53 }
 0x1e9   : > { %2386 = vmatprep.mubr.msk.f32.mxu1 %vm329_vm0, %v1243_v54 }
 0x1eb   : > { %v1244_v55 = vpop.trf.xlu0  ;;  %v1275_v56 = vpop.trf.xlu1 }
 0x1ec   : > { %2387 = vmatmul.mubr.msk.f32.gmra.mrb[32].mxu1 %vm329_vm0, %v1244_v55 }
 0x1ed   : > { %2389 = vmatprep.mubr.msk.f32.mxu1 %vm329_vm0, %v1275_v56 }
 0x1ef   : > { %v1276_v57 = vpop.trf.xlu1  ;;  %v1307_v58 = vpop.trf.xlu0 }
 0x1f0   : > { %2390 = vmatmul.mubr.msk.f32.gmra.mrb[34].mxu1 %vm329_vm0, %v1276_v57 }
 0x1f1   : > { %2392 = vmatprep.mubr.msk.f32.mxu1 %vm329_vm0, %v1307_v58 }
 0x1f3   : > { %v1308_v59 = vpop.trf.xlu0  ;;  %v1339_v60 = vpop.trf.xlu1 }
 0x1f4   : > { %2393 = vmatmul.mubr.msk.f32.gmra.mrb[36].mxu1 %vm329_vm0, %v1308_v59 }
 0x1f5   : > { %2395 = vmatprep.mubr.msk.f32.mxu1 %vm329_vm0, %v1339_v60 }
 0x1f7   : > { %v1340_v61 = vpop.trf.xlu1 }
 0x1f8   : > { %2396 = vmatmul.mubr.msk.f32.gmra.mrb[38].mxu1 %vm329_vm0, %v1340_v61 }
 0x27f   : > { %v2340_v62 = vpop.f32.mrb[0].mxu1 }
 0x280   : > { %v1543_v63 = vpop.f32.mrb[1].mxu1  ;;  %v1743_v7 = vmul.f32 %v2340_v62, %v2340_v62 }
 0x281   : > { %v1742_v11 = vmul.f32 %v1543_v63, %v1543_v63 }
 0x283   : > { %v2343_v0 = vpop.f32.mrb[2].mxu1 }
 0x284   : > { %v1553_v1 = vpop.f32.mrb[3].mxu1  ;;  %v1745_v17 = vmul.f32 %v2343_v0, %v2343_v0 }
 0x285   : > { %v1744_v21 = vmul.f32 %v1553_v1, %v1553_v1 }
 0x287   : > { %v2346_v2 = vpop.f32.mrb[4].mxu1 }
 0x288   : > { %v1563_v3 = vpop.f32.mrb[5].mxu1  ;;  %v2923_v27 = vmul.f32 %v2346_v2, %v2346_v2 }
 0x289   : > { %v1746_v31 = vmul.f32 %v1563_v3, %v1563_v3 }
 0x28b   : > { %v2349_v4 = vpop.f32.mrb[6].mxu1 }
 0x28c   : > { %v1573_v5 = vpop.f32.mrb[7].mxu1  ;;  %v2930_v37 = vmul.f32 %v2349_v4, %v2349_v4 }
 0x28d   : > { %v2936_v41 = vmul.f32 %v1573_v5, %v1573_v5 }
 0x28f   : > { %v2352_v6 = vpop.f32.mrb[8].mxu1 }
 0x290   : > { %v1751_v8 = vmul.f32 %v2352_v6, %v2352_v6  ;;  %v2915_v9 = vmul.f32 %v2352_v6, %v2340_v62  ;;  %v1583_v10 = vpop.f32.mrb[9].mxu1 }
 0x291   : > { %v1750_v12 = vmul.f32 %v1583_v10, %v1583_v10  ;;  %v2917_v13 = vmul.f32 %v1583_v10, %v1543_v63 }
 0x292   : > { %v1831_v14 = vadd.f32 %v1751_v8, %v1743_v7 }
 0x293   : > { %v1830_v15 = vadd.f32 %v1750_v12, %v1742_v11  ;;  %v2355_v16 = vpop.f32.mrb[10].mxu1 }
 0x294   : > { %v1753_v18 = vmul.f32 %v2355_v16, %v2355_v16  ;;  %v2919_v19 = vmul.f32 %v2355_v16, %v2343_v0  ;;  %v1593_v20 = vpop.f32.mrb[11].mxu1 }
 0x295   : > { %v1752_v22 = vmul.f32 %v1593_v20, %v1593_v20  ;;  %v2921_v23 = vmul.f32 %v1593_v20, %v1553_v1 }
 0x296   : > { %v1833_v24 = vadd.f32 %v1753_v18, %v1745_v17 }
 0x297   : > { %v1832_v25 = vadd.f32 %v1752_v22, %v1744_v21  ;;  %v2358_v26 = vpop.f32.mrb[12].mxu1 }
 0x298   : > { %v1755_v28 = vmul.f32 %v2358_v26, %v2358_v26  ;;  %v2925_v29 = vmul.f32 %v2358_v26, %v2346_v2  ;;  %v1603_v30 = vpop.f32.mrb[13].mxu1 }
 0x299   : > { %v1754_v32 = vmul.f32 %v1603_v30, %v1603_v30  ;;  %v2927_v33 = vmul.f32 %v1603_v30, %v1563_v3 }
 0x29a   : > { %v1835_v34 = vadd.f32 %v1755_v28, %v2923_v27 }
 0x29b   : > { %v1834_v35 = vadd.f32 %v1754_v32, %v1746_v31  ;;  %v2361_v36 = vpop.f32.mrb[14].mxu1 }
 0x29c   : > { %v2932_v38 = vmul.f32 %v2361_v36, %v2361_v36  ;;  %v2934_v39 = vmul.f32 %v2361_v36, %v2349_v4  ;;  %v1613_v40 = vpop.f32.mrb[15].mxu1 }
 0x29d   : > { %v2938_v42 = vmul.f32 %v1613_v40, %v1613_v40  ;;  %v2940_v43 = vmul.f32 %v1613_v40, %v1573_v5  ;;  %v1839_v5 = vadd.f32 0.0001, %v1831_v14 }
 0x29e   : > { %v2944_v44 = vadd.f32 %v2932_v38, %v2930_v37 }
 0x29f   : > { %v2948_v45 = vadd.f32 %v2938_v42, %v2936_v41  ;;  %v2364_v46 = vpop.f32.mrb[16].mxu1 }
 0x2a0   : > { %v1767_v47 = vsub.f32 %v2364_v46, %v1743_v7  ;;  %v1623_v48 = vpop.f32.mrb[17].mxu1 }
 0x2a1   : > { %v1766_v49 = vsub.f32 %v1623_v48, %v1742_v11  ;;  %v1838_v11 = vadd.f32 0.0001, %v1830_v15  ;;  %v1843_v15 = vadd.f32 0.0001, %v1835_v34  ;;  %v1845_v34 = vadd.f32 0.0001, %v2944_v44 }
 0x2a3   : > { %v2367_v50 = vpop.f32.mrb[18].mxu1 }
 0x2a4   : > { %v1769_v51 = vsub.f32 %v2367_v50, %v1745_v17  ;;  %v1633_v52 = vpop.f32.mrb[19].mxu1 }
 0x2a5   : > { %v1768_v53 = vsub.f32 %v1633_v52, %v1744_v21 }
 0x2a7   : > { %v2370_v54 = vpop.f32.mrb[20].mxu1 }
 0x2a8   : > { %v1771_v55 = vsub.f32 %v2370_v54, %v2923_v27  ;;  %v1643_v56 = vpop.f32.mrb[21].mxu1 }
 0x2a9   : > { %v1770_v57 = vsub.f32 %v1643_v56, %v1746_v31  ;;  %v1841_v31 = vadd.f32 0.0001, %v1833_v24  ;;  %v1790_v56 = vmul.f32 2.0, %v2917_v13 }
 0x2ab   : > { %v2373_v58 = vpop.f32.mrb[22].mxu1 }
 0x2ac   : > { %v1773_v59 = vsub.f32 %v2373_v58, %v2930_v37  ;;  %v1653_v60 = vpop.f32.mrb[23].mxu1  ;;  %v1844_v58 = vadd.f32 0.0001, %v2948_v45 }
 0x2ad   : > { %v1772_v61 = vsub.f32 %v1653_v60, %v2936_v41 }
 0x2af   : > { %v2376_v62 = vpop.f32.mrb[24].mxu1 }
 0x2b0   : > { %v1775_v63 = vsub.f32 %v2376_v62, %v1751_v8  ;;  %v1663_v0 = vpop.f32.mrb[25].mxu1 }
 0x2b1   : > { %v1774_v1 = vsub.f32 %v1663_v0, %v1750_v12  ;;  %v1840_v12 = vadd.f32 0.0001, %v1832_v25 }
 0x2b2   : > { %v1847_v2 = vadd.f32 %v1775_v63, %v1767_v47  ;;  %v1792_v63 = vmul.f32 2.0, %v2921_v23 }
 0x2b3   : > { %v1846_v3 = vadd.f32 %v1774_v1, %v1766_v49  ;;  %v2379_v4 = vpop.f32.mrb[26].mxu1 }
 0x2b4   : > { %v1855_v6 = vadd.f32 0.0009, %v1847_v2  ;;  %v1777_v7 = vsub.f32 %v2379_v4, %v1753_v18  ;;  %v1673_v10 = vpop.f32.mrb[27].mxu1 }
 0x2b5   : > { %v1854_v16 = vadd.f32 0.0009, %v1846_v3  ;;  %v1776_v17 = vsub.f32 %v1673_v10, %v1752_v22 }
 0x2b6   : > { %v1863_v20 = vmul.f32 %v1855_v6, %v1839_v5  ;;  %v1849_v21 = vadd.f32 %v1777_v7, %v1769_v51  ;;  %v1842_v51 = vadd.f32 0.0001, %v1834_v35  ;;  %v1798_v5 = vadd.f32 0.0001, %v1790_v56 }
 0x2b7   : > { %v1862_v26 = vmul.f32 %v1854_v16, %v1838_v11  ;;  %v1848_v27 = vadd.f32 %v1776_v17, %v1768_v53  ;;  %v2382_v30 = vpop.f32.mrb[28].mxu1  ;;  %v1800_v17 = vadd.f32 0.0001, %v1792_v63 }
 0x2b8   : > { %v1857_v36 = vadd.f32 0.0009, %v1849_v21  ;;  %v1779_v8 = vsub.f32 %v2382_v30, %v1755_v28  ;;  %v1683_v37 = vpop.f32.mrb[29].mxu1  ;;  %2486 = vrcp.f32 %v1863_v20  ;;  %v1794_v20 = vmul.f32 2.0, %v2927_v33 }
 0x2b9   : > { %v1856_v40 = vadd.f32 0.0009, %v1848_v27  ;;  %v1778_v41 = vsub.f32 %v1683_v37, %v1754_v32  ;;  %2488 = vrcp.f32 %v1862_v26  ;;  %v1791_v32 = vmul.f32 2.0, %v2915_v9 }
 0x2ba   : > { %v1865_v46 = vmul.f32 %v1857_v36, %v1841_v31  ;;  %v1851_v14 = vadd.f32 %v1779_v8, %v1771_v55 }
 0x2bb   : > { %v1864_v47 = vmul.f32 %v1856_v40, %v1840_v12  ;;  %v1850_v18 = vadd.f32 %v1778_v41, %v1770_v57  ;;  %v2385_v48 = vpop.f32.mrb[30].mxu1  ;;  %v1799_v2 = vadd.f32 0.0001, %v1791_v32 }
 0x2bc   : > { %v1859_v49 = vadd.f32 0.0009, %v1851_v14  ;;  %v1781_v22 = vsub.f32 %v2385_v48, %v2932_v38  ;;  %v1693_v50 = vpop.f32.mrb[31].mxu1  ;;  %2490 = vrcp.f32 %v1865_v46 }
 0x2bd   : > { %v1858_v52 = vadd.f32 0.0009, %v1850_v18  ;;  %v1780_v24 = vsub.f32 %v1693_v50, %v2938_v42  ;;  %2492 = vrcp.f32 %v1864_v47  ;;  %v1802_v18 = vadd.f32 0.0001, %v1794_v20 }
 0x2be   : > { %v1867_v28 = vmul.f32 %v1859_v49, %v1843_v15  ;;  %v1853_v25 = vadd.f32 %v1781_v22, %v1773_v59  ;;  %v1793_v59 = vmul.f32 2.0, %v2919_v19  ;;  %v1797_v50 = vmul.f32 2.0, %v2934_v39 }
 0x2bf   : > { %v1866_v53 = vmul.f32 %v1858_v52, %v1842_v51  ;;  %v1852_v54 = vadd.f32 %v1780_v24, %v1772_v61  ;;  %v2388_v55 = vpop.f32.mrb[32].mxu1 }
 0x2c0   : > { %v1861_v57 = vadd.f32 0.0009, %v1853_v25  ;;  %v1783_v38 = vsub.f32 %v2388_v55, %v2915_v9  ;;  %v1703_v35 = vpop.f32.mrb[33].mxu1  ;;  %v1795_v9 = vmul.f32 2.0, %v2925_v29  ;;  %2494 = vrcp.f32 %v1867_v28 }
 0x2c1   : > { %v1860_v42 = vadd.f32 0.0009, %v1852_v54  ;;  %v1782_v60 = vsub.f32 %v1703_v35, %v2917_v13  ;;  %v1801_v7 = vadd.f32 0.0001, %v1793_v59  ;;  %2496 = vrcp.f32 %v1866_v53 }
 0x2c2   : > { %v1869_v62 = vmul.f32 %v1861_v57, %v1845_v34  ;;  %v1807_v61 = vmul.f32 2.0, %v1783_v38  ;;  %v2487_v16 = vpop.eup %2486  ;;  %v1803_v31 = vadd.f32 0.0001, %v1795_v9  ;;  %v1796_v28 = vmul.f32 2.0, %v2940_v43 }
 0x2c3   : > { %v1868_v0 = vmul.f32 %v1860_v42, %v1844_v58  ;;  %v1806_v1 = vmul.f32 2.0, %v1782_v60  ;;  %v2391_v44 = vpop.f32.mrb[34].mxu1  ;;  %v2489_v30 = vpop.eup %2488  ;;  %v1805_v58 = vadd.f32 0.0001, %v1797_v50 }
 0x2c4   : > { %v1815_v3 = vadd.f32 0.0009, %v1807_v61  ;;  %v1785_v45 = vsub.f32 %v2391_v44, %v2919_v19  ;;  %v1713_v4 = vpop.f32.mrb[35].mxu1  ;;  %2498 = vrcp.f32 %v1869_v62  ;;  %v1804_v60 = vadd.f32 0.0001, %v1796_v28 }
 0x2c5   : > { %v1814_v13 = vadd.f32 0.0009, %v1806_v1  ;;  %v1784_v6 = vsub.f32 %v1713_v4, %v2921_v23  ;;  %2500 = vrcp.f32 %v1868_v0 }
 0x2c6   : > { %v1823_v10 = vmul.f32 %v1815_v3, %v1799_v2  ;;  %v1809_v11 = vmul.f32 2.0, %v1785_v45  ;;  %v2491_v47 = vpop.eup %2490 }
 0x2c7   : > { %v1822_v21 = vmul.f32 %v1814_v13, %v1798_v5  ;;  %v1808_v26 = vmul.f32 2.0, %v1784_v6  ;;  %v2394_v27 = vpop.f32.mrb[36].mxu1  ;;  %v2493_v22 = vpop.eup %2492  ;;  %v2606_v5 = vmov 0.0|0.0   ;;  %v2608_v13 = vmov 0.0  }
 0x2c8   : > { %v1817_v19 = vadd.f32 0.0009, %v1809_v11  ;;  %v1787_v36 = vsub.f32 %v2394_v27, %v2925_v29  ;;  %v1723_v8 = vpop.f32.mrb[37].mxu1  ;;  %v1879_v37 = vmul.f32 %v2487_v16, %v1823_v10  ;;  %2425 = vmatprep.subr.bf16.mxu0 %v2606_v5  ;;  %2414 = vmatprep.mubr.msk.f32.mxu0 %vm2607_vm1, %v2608_v13 }
 0x2c9   : > { %v1816_v23 = vadd.f32 0.0009, %v1808_v26  ;;  %v1786_v12 = vsub.f32 %v1723_v8, %v2927_v33  ;;  %v1878_v40 = vmul.f32 %v2489_v30, %v1822_v21 }
 0x2ca   : > { %v1825_v41 = vmul.f32 %v1817_v19, %v1801_v7  ;;  %v1811_v46 = vmul.f32 2.0, %v1787_v36  ;;  %v1889_v14 = vsel %vm329_vm0, %v1879_v37, 0.0  ;;  %v2495_v34 = vpop.eup %2494  ;;  %v1910_v19 = vld [vmem:[%s3004_s2] sm:$0xf] }
 0x2cb   : > { %v1824_v48 = vmul.f32 %v1816_v23, %v1800_v17  ;;  %v1810_v15 = vmul.f32 2.0, %v1786_v12  ;;  %1890 = vadd.xlane.f32.xlu1 %v1889_v14  ;;  %v2397_v49 = vpop.f32.mrb[38].mxu1  ;;  %v1886_v29 = vsel %vm329_vm0, %v1878_v40, 0.0  ;;  %v2497_v35 = vpop.eup %2496 }
 0x2cc   : > { %v1819_v51 = vadd.f32 0.0009, %v1811_v46  ;;  %v1789_v33 = vsub.f32 %v2397_v49, %v2934_v39  ;;  %1887 = vadd.xlane.f32.xlu0 %v1886_v29  ;;  %v1733_v52 = vpop.f32.mrb[39].mxu1  ;;  %v1881_v24 = vmul.f32 %v2491_v47, %v1825_v41 }
 0x2cd   : > { %v1818_v25 = vadd.f32 0.0009, %v1810_v15  ;;  %v1788_v32 = vsub.f32 %v1733_v52, %v2940_v43  ;;  %v1880_v53 = vmul.f32 %v2493_v22, %v1824_v48 }
 0x2ce   : > { %v1827_v54 = vmul.f32 %v1819_v51, %v1803_v31  ;;  %v1813_v55 = vmul.f32 2.0, %v1789_v33  ;;  %v1895_v56 = vsel %vm329_vm0, %v1881_v24, 0.0  ;;  %v2499_v43 = vpop.eup %2498 }
 0x2cf   : > { %v1826_v57 = vmul.f32 %v1818_v25, %v1802_v18  ;;  %v1812_v38 = vmul.f32 2.0, %v1788_v32  ;;  %1896 = vadd.xlane.f32.xlu1 %v1895_v56  ;;  %v1892_v63 = vsel %vm329_vm0, %v1880_v53, 0.0  ;;  %v2501_v44 = vpop.eup %2500 }
 0x2d0   : > { %v1821_v39 = vadd.f32 0.0009, %v1813_v55  ;;  %v1883_v42 = vmul.f32 %v2495_v34, %v1827_v54 }
 0x2d1   : > { %v1820_v59 = vadd.f32 0.0009, %v1812_v38  ;;  %v1882_v62 = vmul.f32 %v2497_v35, %v1826_v57 }
 0x2d2   : > { %v1829_v61 = vmul.f32 %v1821_v39, %v1805_v58  ;;  %v1901_v3 = vsel %vm329_vm0, %v1883_v42, 0.0 }
 0x2d3   : > { %v1828_v0 = vmul.f32 %v1820_v59, %v1804_v60  ;;  %1893 = vadd.xlane.f32.xlu1 %v1892_v63  ;;  %v1898_v1 = vsel %vm329_vm0, %v1882_v62, 0.0 }
 0x2d4   : > { %1899 = vadd.xlane.f32.xlu0 %v1898_v1  ;;  %v1885_v2 = vmul.f32 %v2499_v43, %v1829_v61 }
 0x2d5   : > { %v1884_v9 = vmul.f32 %v2501_v44, %v1828_v0 }
 0x2d6   : > { %v1907_v4 = vsel %vm329_vm0, %v1885_v2, 0.0 }
 0x2d7   : > { %1902 = vadd.xlane.f32.xlu1 %v1901_v3  ;;  %v1904_v45 = vsel %vm329_vm0, %v1884_v9, 0.0 }
 0x2d8   : > { %1905 = vadd.xlane.f32.xlu0 %v1904_v45 }
 0x2db   : > { %1908 = vadd.xlane.f32.xlu1 %v1907_v4 }
 0x358   : > { %v1891_v6 = vpop.xlane.xlu1 %1890 }
 0x359   : > { %v1888_v7 = vpop.xlane.xlu0 %1887 }
 0x35a   : > { %v2426_v10 = vpack.c.bf16 %v1891_v6, %v1888_v7 }
 0x35c   : > { %2427 = vmatpush3.bf16.msra.mxu0 %v2426_v10  ;;  %v1897_v11 = vpop.xlane.xlu1 %1896 }
 0x35d   : > { %2428 = vmatprep.subr.bf16.mxu0 %v2606_v5 }
 0x360   : > { %v1894_v16 = vpop.xlane.xlu1 %1893 }
 0x361   : > { %v2429_v17 = vpack.c.bf16 %v1897_v11, %v1894_v16  ;;  %v1900_v20 = vpop.xlane.xlu0 %1899 }
 0x363   : > { %2430 = vmatpush3.bf16.msra.mxu0 %v2429_v17 }
 0x364   : > { %v1903_v21 = vpop.xlane.xlu1 %1902  ;;  %2431 = vmatprep.subr.bf16.mxu0 %v2606_v5 }
 0x365   : > { %v2432_v26 = vpack.c.bf16 %v1903_v21, %v1900_v20  ;;  %v1906_v27 = vpop.xlane.xlu0 %1905 }
 0x367   : > { %2433 = vmatpush3.bf16.msra.mxu0 %v2432_v26 }
 0x368   : > { %v1909_v30 = vpop.xlane.xlu1 %1908  ;;  %2434 = vmatprep.subr.bf16.mxu0 %v2606_v5 }
 0x369   : > { %v2435_v31 = vpack.c.bf16 %v1909_v30, %v1906_v27 }
 0x36b   : > { %2436 = vmatpush3.bf16.msra.mxu0 %v2435_v31 }
 0x36e   : > { %2415 = vmatmul.mubr.msk.f32.vlgmr.msra.gmra.mrb[40].mxu0 %vm1911_vm2, %v1910_v19 }
 0x441   : > { %v1981_v36 = vpop.f32.mrb[40].mxu0 }
 0x442   : > { %1986 = vst.msk [vmem:[%s286_s15] sm:$0xf] %vm1985_vm3, %v1981_v36  ;;  %v2416_v8 = vpop.f32.mrb[41].mxu0 }
 0x443 PF: > { %p18_p11 = scmp.ge.s32.totalorder %s2661_s23, 4   ;;  %s3014_s18 = smov %s2592_s19 }
 0x444   : > { %s3015_s19 = smov %s2596_s20  ;;  %s3016_s20 = smov %s2671_s26 }
 0x445   : > { %s3017_s21 = smov %s2661_s23  ;;  %20 = sbr.rel (!%p18_p11) target bundleno = 5 (0x5), region = 93 }
 0x44c   :  { %2006 = vsyncpa [#allocation3], 1 }
 0x44d   :  { %2008 = vsyncpa [#allocation3 + $0x1], 1 }
 0x44e   :  { %2009 = vsyncpa [#allocation5], 1 }
 0x44f   :  { %2011 = vsyncpa [#allocation5 + $0x1], 1 }

</bundles_post_ra>
